<compile_context>
chip_gen: v5e
topology: v5e:2x2
jax: 0.10.0
libtpu: 0.0.40
codegen_flags: <defaults>
</compile_context>

<pallas_src>
import functools

import jax
import jax.numpy as jnp
from jax.experimental import pallas as pl
from jax.experimental.pallas import tpu as pltpu


def _round_up(x, m):
    return (x + m - 1) // m * m


def _loss_kernel(mel_out_ref, mel_post_ref, mel_tgt_ref,
                 gate_out_ref, gate_tgt_ref,
                 dur_out_ref, align_tgt_ref,
                 out_ref,
                 acc_mel, acc_gate, acc_dur,
                 *, inv_mel_n, inv_gate_n, inv_dur_n):
    step = pl.program_id(0)

    @pl.when(step == 0)
    def _init():
        acc_mel[...] = jnp.zeros_like(acc_mel)
        # Gate / duration terms: tiny blocks with a constant index_map (resident
        # in VMEM, DMA'd once) -> reduce them exactly once, off the mel hot loop.
        x = gate_out_ref[...].astype(jnp.float32)
        y = gate_tgt_ref[...].astype(jnp.float32)
        # stable BCE-with-logits: max(x,0) - x*y + log1p(exp(-|x|))
        bce = jnp.maximum(x, 0.0) - x * y + jnp.log1p(jnp.exp(-jnp.abs(x)))
        acc_gate[...] = jnp.sum(bce, keepdims=True)
        d = dur_out_ref[...].astype(jnp.float32) - align_tgt_ref[...].astype(jnp.float32)
        acc_dur[...] = jnp.sum(jnp.abs(d), keepdims=True)

    # ---- hot loop: one (TM, T) tile of each mel tensor per grid step ----
    tgt = mel_tgt_ref[...].astype(jnp.float32)
    d1 = mel_out_ref[...].astype(jnp.float32) - tgt
    d2 = mel_post_ref[...].astype(jnp.float32) - tgt
    acc_mel[...] += jnp.sum(d1 * d1, keepdims=True) + jnp.sum(d2 * d2, keepdims=True)

    @pl.when(step == pl.num_programs(0) - 1)
    def _finalize():
        out_ref[0] = jnp.sum(acc_mel[...]) * inv_mel_n
        out_ref[1] = jnp.sum(acc_gate[...]) * inv_gate_n
        out_ref[2] = jnp.sum(acc_dur[...]) * inv_dur_n


def _run_loss_kernel(mel_out2, mel_post2, mel_tgt2,
                     gate_out2, gate_tgt2, dur2, align2,
                     tile_rows, inv_mel_n, inv_gate_n, inv_dur_n):
    rows, T = mel_out2.shape
    assert rows % tile_rows == 0
    n_steps = rows // tile_rows

    mel_spec = pl.BlockSpec((tile_rows, T), lambda i: (i, 0))

    def resident(shape):
        # full-array block, constant index -> single DMA, stays resident.
        return pl.BlockSpec(shape, lambda i: (0, 0))

    kernel = functools.partial(
        _loss_kernel,
        inv_mel_n=inv_mel_n, inv_gate_n=inv_gate_n, inv_dur_n=inv_dur_n)

    return pl.pallas_call(
        kernel,
        out_shape=jax.ShapeDtypeStruct((3,), jnp.float32),
        grid_spec=pltpu.PrefetchScalarGridSpec(
            num_scalar_prefetch=0,
            grid=(n_steps,),
            in_specs=[mel_spec, mel_spec, mel_spec,
                      resident(gate_out2.shape), resident(gate_tgt2.shape),
                      resident(dur2.shape), resident(align2.shape)],
            out_specs=pl.BlockSpec(memory_space=pltpu.MemorySpace.SMEM),
            scratch_shapes=[pltpu.VMEM((1, 1), jnp.float32),
                            pltpu.VMEM((1, 1), jnp.float32),
                            pltpu.VMEM((1, 1), jnp.float32)],
        ),
        compiler_params=pltpu.CompilerParams(
            dimension_semantics=("arbitrary",)),
    )(mel_out2, mel_post2, mel_tgt2, gate_out2, gate_tgt2, dur2, align2)


def tacotron2_loss(model_output, targets, tile_rows=None):
    """JAX/Pallas equivalent of Tacotron2Loss.forward.

    model_output = (mel_out, mel_out_postnet, gate_out, attention, duration_out)
    targets      = (mel_target, gate_target, alignment_target)
    returns      = (total_loss, duration_loss)  both scalar f32
    """
    mel_target, gate_target, alignment_target = targets
    mel_out, mel_out_postnet, gate_out, _attention, duration_out = model_output

    B, n_mel, T = mel_out.shape
    rows = B * n_mel

    # Stream mel tensors in their native dtype; no f32 up-cast copy in HBM.
    mel2 = mel_out.reshape(rows, T)
    post2 = mel_out_postnet.reshape(rows, T)
    tgt2 = mel_target.reshape(rows, T)

    gate_out2 = gate_out.reshape(B, -1)
    gate_tgt2 = gate_target.reshape(B, -1)

    if duration_out is not None:
        dur2 = duration_out.reshape(B, -1)
        align2 = alignment_target.reshape(B, -1)
        inv_dur_n = 1.0 / float(dur2.size)
    else:
        # dummy tensors; the L1 output is ignored in this branch
        dur2 = jnp.zeros((B, 8), jnp.float32)
        align2 = jnp.zeros((B, 8), jnp.float32)
        inv_dur_n = 1.0

    # Tile the mel row axis: 512 rows x full T keeps 3 inputs x 2 pipeline
    # buffers well under the scoped VMEM limit on v5e/v6e/v7x (~85% HBM BW).
    if tile_rows is None:
        tile_rows = 512 if rows >= 512 else _round_up(rows, 8)
    padded_rows = _round_up(rows, tile_rows)
    if padded_rows != rows:
        # padded rows are zero in all three tensors -> contribute 0 to the sums
        pad = ((0, padded_rows - rows), (0, 0))
        mel2 = jnp.pad(mel2, pad)
        post2 = jnp.pad(post2, pad)
        tgt2 = jnp.pad(tgt2, pad)

    inv_mel_n = 1.0 / float(rows * T)       # both MSE terms share N = B*n_mel*T
    inv_gate_n = 1.0 / float(gate_out2.size)

    parts = _run_loss_kernel(mel2, post2, tgt2, gate_out2, gate_tgt2,
                             dur2, align2, tile_rows,
                             inv_mel_n, inv_gate_n, inv_dur_n)
    mel_loss, gate_loss, l1_loss = parts[0], parts[1], parts[2]

    duration_loss = mel_loss if duration_out is None else l1_loss
    total = mel_loss + gate_loss + duration_loss
    return total, duration_loss


if __name__ == "__main__":
    key = jax.random.PRNGKey(0)
    B, n_mel, T, T_enc = 2, 8, 64, 16
    ks = jax.random.split(key, 8)

    mel_out = jax.random.normal(ks[0], (B, n_mel, T), jnp.float32)
    mel_out_postnet = jax.random.normal(ks[1], (B, n_mel, T), jnp.float32)
    mel_target = jax.random.normal(ks[2], (B, n_mel, T), jnp.float32)
    gate_out = jax.random.normal(ks[3], (B, T), jnp.float32)
    gate_target = (jax.random.uniform(ks[4], (B, T)) > 0.5).astype(jnp.float32)
    attention = jax.random.normal(ks[5], (B, T, T_enc), jnp.float32)
    duration_out = jax.random.normal(ks[6], (B, T_enc), jnp.float32)
    alignment_target = jax.random.uniform(ks[7], (B, T_enc), minval=0.0, maxval=5.0)

    model_output = (mel_out, mel_out_postnet, gate_out, attention, duration_out)
    targets = (mel_target, gate_target, alignment_target)

    # tile_rows=8 forces a multi-step grid even at toy sizes so the pipelined
    # init/accumulate/finalize path is exercised (production auto-picks 512).
    total, dur_loss = tacotron2_loss(model_output, targets, tile_rows=8)
    jax.block_until_ready((total, dur_loss))

    # sanity check against pure-JAX reference
    mel_ref = jnp.mean((mel_out - mel_target) ** 2) + jnp.mean((mel_out_postnet - mel_target) ** 2)
    x, y = gate_out, gate_target
    gate_ref = jnp.mean(jnp.maximum(x, 0.0) - x * y + jnp.log1p(jnp.exp(-jnp.abs(x))))
    dur_ref = jnp.mean(jnp.abs(duration_out - alignment_target))
    total_ref = mel_ref + gate_ref + dur_ref
    assert jnp.allclose(total, total_ref, rtol=1e-5, atol=1e-5)
    assert jnp.allclose(dur_loss, dur_ref, rtol=1e-5, atol=1e-5)

    # also exercise the duration_out=None branch (duration_loss falls back to mel_loss)
    total2, dur_loss2 = tacotron2_loss(
        (mel_out, mel_out_postnet, gate_out, attention, None), targets, tile_rows=8)
    jax.block_until_ready((total2, dur_loss2))
    assert jnp.allclose(dur_loss2, mel_ref, rtol=1e-5, atol=1e-5)
    assert jnp.allclose(total2, mel_ref + gate_ref + mel_ref, rtol=1e-5, atol=1e-5)

    print("KERNEL_OK")
</pallas_src>

<mosaic_0001>
module attributes {stable_mosaic.version = 11 : i64} {
  func.func @_loss_kernel(%arg0: i32, %arg1: memref<8x64xf32, #tpu.memory_space<vmem>>, %arg2: memref<8x64xf32, #tpu.memory_space<vmem>>, %arg3: memref<8x64xf32, #tpu.memory_space<vmem>>, %arg4: memref<2x64xf32, #tpu.memory_space<vmem>>, %arg5: memref<2x64xf32, #tpu.memory_space<vmem>>, %arg6: memref<2x16xf32, #tpu.memory_space<vmem>>, %arg7: memref<2x16xf32, #tpu.memory_space<vmem>>, %arg8: memref<3xf32, #tpu.memory_space<smem>>, %arg9: memref<1x1xf32, #tpu.memory_space<vmem>>, %arg10: memref<1x1xf32, #tpu.memory_space<vmem>>, %arg11: memref<1x1xf32, #tpu.memory_space<vmem>>) attributes {dimension_semantics = [#tpu.dimension_semantics<arbitrary>], iteration_bounds = array<i64: 2>, scalar_prefetch = 0 : i64, scratch_operands = 3 : i64, tpu.core_type = #tpu.core_type<tc>, window_params = [{transform_indices = @transform_0, window_bounds = array<i64: 8, 64>}, {transform_indices = @transform_1, window_bounds = array<i64: 8, 64>}, {transform_indices = @transform_2, window_bounds = array<i64: 8, 64>}, {pipeline_mode = #tpu.pipeline_mode<synchronous>, transform_indices = @transform_3, window_bounds = array<i64: 2, 64>}, {pipeline_mode = #tpu.pipeline_mode<synchronous>, transform_indices = @transform_4, window_bounds = array<i64: 2, 64>}, {pipeline_mode = #tpu.pipeline_mode<synchronous>, transform_indices = @transform_5, window_bounds = array<i64: 2, 16>}, {pipeline_mode = #tpu.pipeline_mode<synchronous>, transform_indices = @transform_6, window_bounds = array<i64: 2, 16>}, {transform_indices = @transform_7, window_bounds = array<i64: 3>}]} {
    %c0_i32 = arith.constant 0 : i32
    %0 = arith.cmpi eq, %arg0, %c0_i32 : i32
    %1 = arith.extui %0 : i1 to i32
    %c0_i32_0 = arith.constant 0 : i32
    %2 = arith.cmpi ne, %1, %c0_i32_0 : i32
    scf.if %2 {
      %cst_12 = arith.constant 0.000000e+00 : f32
      %27 = vector.broadcast %cst_12 : f32 to vector<1x1xf32>
      %c0_13 = arith.constant 0 : index
      %c0_14 = arith.constant 0 : index
      %28 = vector.load %arg9[%c0_13, %c0_14] : memref<1x1xf32, #tpu.memory_space<vmem>>, vector<1x1xf32>
      tpu.vector_store %arg9[%c0_13, %c0_14], %27 {strides = array<i32>} : memref<1x1xf32, #tpu.memory_space<vmem>>, vector<1x1xf32>,
      %c0_15 = arith.constant 0 : index
      %c0_16 = arith.constant 0 : index
      %29 = vector.load %arg4[%c0_15, %c0_16] : memref<2x64xf32, #tpu.memory_space<vmem>>, vector<2x64xf32>
      %c0_17 = arith.constant 0 : index
      %c0_18 = arith.constant 0 : index
      %30 = vector.load %arg5[%c0_17, %c0_18] : memref<2x64xf32, #tpu.memory_space<vmem>>, vector<2x64xf32>
      %cst_19 = arith.constant 0.000000e+00 : f32
      %31 = vector.broadcast %cst_19 : f32 to vector<2x64xf32>
      %32 = arith.maximumf %29, %31 : vector<2x64xf32>
      %33 = arith.mulf %29, %30 : vector<2x64xf32>
      %34 = arith.subf %32, %33 : vector<2x64xf32>
      %35 = math.absf %29 : vector<2x64xf32>
      %cst_20 = arith.constant 0.000000e+00 : f32
      %36 = vector.broadcast %cst_20 : f32 to vector<2x64xf32>
      %37 = arith.subf %36, %35 : vector<2x64xf32>
      %38 = math.exp %37 : vector<2x64xf32>
      %39 = math.log1p %38 : vector<2x64xf32>
      %40 = arith.addf %34, %39 : vector<2x64xf32>
      %41 = vector.shape_cast %40 : vector<2x64xf32> to vector<1x2x64xf32>
      %cst_21 = arith.constant dense<0.000000e+00> : vector<1xf32>
      %42 = vector.multi_reduction <add>, %41, %cst_21 [1, 2] : vector<1x2x64xf32> to vector<1xf32>
      %43 = vector.shape_cast %42 : vector<1xf32> to vector<1x1x1xf32>
      %44 = vector.extract %43[0, 0, 0] : f32 from vector<1x1x1xf32>
      %45 = vector.broadcast %44 : f32 to vector<1x1xf32>
      %c0_22 = arith.constant 0 : index
      %c0_23 = arith.constant 0 : index
      %46 = vector.load %arg10[%c0_22, %c0_23] : memref<1x1xf32, #tpu.memory_space<vmem>>, vector<1x1xf32>
      tpu.vector_store %arg10[%c0_22, %c0_23], %45 {strides = array<i32>} : memref<1x1xf32, #tpu.memory_space<vmem>>, vector<1x1xf32>,
      %c0_24 = arith.constant 0 : index
      %c0_25 = arith.constant 0 : index
      %47 = vector.load %arg6[%c0_24, %c0_25] : memref<2x16xf32, #tpu.memory_space<vmem>>, vector<2x16xf32>
      %c0_26 = arith.constant 0 : index
      %c0_27 = arith.constant 0 : index
      %48 = vector.load %arg7[%c0_26, %c0_27] : memref<2x16xf32, #tpu.memory_space<vmem>>, vector<2x16xf32>
      %49 = arith.subf %47, %48 : vector<2x16xf32>
      %50 = math.absf %49 : vector<2x16xf32>
      %51 = vector.shape_cast %50 : vector<2x16xf32> to vector<1x2x16xf32>
      %cst_28 = arith.constant dense<0.000000e+00> : vector<1xf32>
      %52 = vector.multi_reduction <add>, %51, %cst_28 [1, 2] : vector<1x2x16xf32> to vector<1xf32>
      %53 = vector.shape_cast %52 : vector<1xf32> to vector<1x1x1xf32>
      %54 = vector.extract %53[0, 0, 0] : f32 from vector<1x1x1xf32>
      %55 = vector.broadcast %54 : f32 to vector<1x1xf32>
      %c0_29 = arith.constant 0 : index
      %c0_30 = arith.constant 0 : index
      %56 = vector.load %arg11[%c0_29, %c0_30] : memref<1x1xf32, #tpu.memory_space<vmem>>, vector<1x1xf32>
      tpu.vector_store %arg11[%c0_29, %c0_30], %55 {strides = array<i32>} : memref<1x1xf32, #tpu.memory_space<vmem>>, vector<1x1xf32>,
    } else {
    }
    %c0 = arith.constant 0 : index
    %c0_1 = arith.constant 0 : index
    %3 = vector.load %arg3[%c0, %c0_1] : memref<8x64xf32, #tpu.memory_space<vmem>>, vector<8x64xf32>
    %c0_2 = arith.constant 0 : index
    %c0_3 = arith.constant 0 : index
    %4 = vector.load %arg1[%c0_2, %c0_3] : memref<8x64xf32, #tpu.memory_space<vmem>>, vector<8x64xf32>
    %5 = arith.subf %4, %3 : vector<8x64xf32>
    %c0_4 = arith.constant 0 : index
    %c0_5 = arith.constant 0 : index
    %6 = vector.load %arg2[%c0_4, %c0_5] : memref<8x64xf32, #tpu.memory_space<vmem>>, vector<8x64xf32>
    %7 = arith.subf %6, %3 : vector<8x64xf32>
    %c0_6 = arith.constant 0 : index
    %c0_7 = arith.constant 0 : index
    %8 = vector.load %arg9[%c0_6, %c0_7] : memref<1x1xf32, #tpu.memory_space<vmem>>, vector<1x1xf32>
    %9 = arith.mulf %5, %5 : vector<8x64xf32>
    %10 = vector.shape_cast %9 : vector<8x64xf32> to vector<1x8x64xf32>
    %cst = arith.constant dense<0.000000e+00> : vector<1xf32>
    %11 = vector.multi_reduction <add>, %10, %cst [1, 2] : vector<1x8x64xf32> to vector<1xf32>
    %12 = vector.shape_cast %11 : vector<1xf32> to vector<1x1x1xf32>
    %13 = vector.extract %12[0, 0, 0] : f32 from vector<1x1x1xf32>
    %14 = vector.broadcast %13 : f32 to vector<1x1xf32>
    %15 = arith.mulf %7, %7 : vector<8x64xf32>
    %16 = vector.shape_cast %15 : vector<8x64xf32> to vector<1x8x64xf32>
    %cst_8 = arith.constant dense<0.000000e+00> : vector<1xf32>
    %17 = vector.multi_reduction <add>, %16, %cst_8 [1, 2] : vector<1x8x64xf32> to vector<1xf32>
    %18 = vector.shape_cast %17 : vector<1xf32> to vector<1x1x1xf32>
    %19 = vector.extract %18[0, 0, 0] : f32 from vector<1x1x1xf32>
    %20 = vector.broadcast %19 : f32 to vector<1x1xf32>
    %21 = arith.addf %14, %20 : vector<1x1xf32>
    %22 = arith.addf %8, %21 : vector<1x1xf32>
    %c0_9 = arith.constant 0 : index
    %c0_10 = arith.constant 0 : index
    %23 = vector.load %arg9[%c0_9, %c0_10] : memref<1x1xf32, #tpu.memory_space<vmem>>, vector<1x1xf32>
    tpu.vector_store %arg9[%c0_9, %c0_10], %22 {strides = array<i32>} : memref<1x1xf32, #tpu.memory_space<vmem>>, vector<1x1xf32>,
    %c1_i32 = arith.constant 1 : i32
    %24 = arith.cmpi eq, %arg0, %c1_i32 : i32
    %25 = arith.extui %24 : i1 to i32
    %c0_i32_11 = arith.constant 0 : i32
    %26 = arith.cmpi ne, %25, %c0_i32_11 : i32
    scf.if %26 {
      %c0_12 = arith.constant 0 : index
      %c0_13 = arith.constant 0 : index
      %27 = vector.load %arg9[%c0_12, %c0_13] : memref<1x1xf32, #tpu.memory_space<vmem>>, vector<1x1xf32>
      %28 = vector.shape_cast %27 : vector<1x1xf32> to vector<1x1x1xf32>
      %cst_14 = arith.constant dense<0.000000e+00> : vector<1xf32>
      %29 = vector.multi_reduction <add>, %28, %cst_14 [1, 2] : vector<1x1x1xf32> to vector<1xf32>
      %30 = vector.shape_cast %29 : vector<1xf32> to vector<1x1x1xf32>
      %31 = vector.extract %30[0, 0, 0] : f32 from vector<1x1x1xf32>
      %cst_15 = arith.constant 9.765625E-4 : f32
      %32 = arith.mulf %31, %cst_15 : f32
      %c0_16 = arith.constant 0 : index
      %33 = memref.load %arg8[%c0_16] : memref<3xf32, #tpu.memory_space<smem>>
      memref.store %32, %arg8[%c0_16] : memref<3xf32, #tpu.memory_space<smem>>
      %c0_17 = arith.constant 0 : index
      %c0_18 = arith.constant 0 : index
      %34 = vector.load %arg10[%c0_17, %c0_18] : memref<1x1xf32, #tpu.memory_space<vmem>>, vector<1x1xf32>
      %35 = vector.shape_cast %34 : vector<1x1xf32> to vector<1x1x1xf32>
      %cst_19 = arith.constant dense<0.000000e+00> : vector<1xf32>
      %36 = vector.multi_reduction <add>, %35, %cst_19 [1, 2] : vector<1x1x1xf32> to vector<1xf32>
      %37 = vector.shape_cast %36 : vector<1xf32> to vector<1x1x1xf32>
      %38 = vector.extract %37[0, 0, 0] : f32 from vector<1x1x1xf32>
      %cst_20 = arith.constant 7.812500e-03 : f32
      %39 = arith.mulf %38, %cst_20 : f32
      %c1 = arith.constant 1 : index
      %40 = memref.load %arg8[%c1] : memref<3xf32, #tpu.memory_space<smem>>
      memref.store %39, %arg8[%c1] : memref<3xf32, #tpu.memory_space<smem>>
      %c0_21 = arith.constant 0 : index
      %c0_22 = arith.constant 0 : index
      %41 = vector.load %arg11[%c0_21, %c0_22] : memref<1x1xf32, #tpu.memory_space<vmem>>, vector<1x1xf32>
      %42 = vector.shape_cast %41 : vector<1x1xf32> to vector<1x1x1xf32>
      %cst_23 = arith.constant dense<0.000000e+00> : vector<1xf32>
      %43 = vector.multi_reduction <add>, %42, %cst_23 [1, 2] : vector<1x1x1xf32> to vector<1xf32>
      %44 = vector.shape_cast %43 : vector<1xf32> to vector<1x1x1xf32>
      %45 = vector.extract %44[0, 0, 0] : f32 from vector<1x1x1xf32>
      %cst_24 = arith.constant 3.125000e-02 : f32
      %46 = arith.mulf %45, %cst_24 : f32
      %c2 = arith.constant 2 : index
      %47 = memref.load %arg8[%c2] : memref<3xf32, #tpu.memory_space<smem>>
      memref.store %46, %arg8[%c2] : memref<3xf32, #tpu.memory_space<smem>>
    } else {
    }
    return
  }
  func.func @transform_0(%arg0: i32) -> (i32, i32) {
    %c0_i32 = arith.constant 0 : i32
    %c0_i32_0 = arith.constant 0 : i32
    return %arg0, %c0_i32 : i32, i32
  }
  func.func @transform_1(%arg0: i32) -> (i32, i32) {
    %c0_i32 = arith.constant 0 : i32
    %c0_i32_0 = arith.constant 0 : i32
    return %arg0, %c0_i32 : i32, i32
  }
  func.func @transform_2(%arg0: i32) -> (i32, i32) {
    %c0_i32 = arith.constant 0 : i32
    %c0_i32_0 = arith.constant 0 : i32
    return %arg0, %c0_i32 : i32, i32
  }
  func.func @transform_3(%arg0: i32) -> (i32, i32) {
    %c0_i32 = arith.constant 0 : i32
    %c0_i32_0 = arith.constant 0 : i32
    %c0_i32_1 = arith.constant 0 : i32
    return %c0_i32, %c0_i32_0 : i32, i32
  }
  func.func @transform_4(%arg0: i32) -> (i32, i32) {
    %c0_i32 = arith.constant 0 : i32
    %c0_i32_0 = arith.constant 0 : i32
    %c0_i32_1 = arith.constant 0 : i32
    return %c0_i32, %c0_i32_0 : i32, i32
  }
  func.func @transform_5(%arg0: i32) -> (i32, i32) {
    %c0_i32 = arith.constant 0 : i32
    %c0_i32_0 = arith.constant 0 : i32
    %c0_i32_1 = arith.constant 0 : i32
    return %c0_i32, %c0_i32_0 : i32, i32
  }
  func.func @transform_6(%arg0: i32) -> (i32, i32) {
    %c0_i32 = arith.constant 0 : i32
    %c0_i32_0 = arith.constant 0 : i32
    %c0_i32_1 = arith.constant 0 : i32
    return %c0_i32, %c0_i32_0 : i32, i32
  }
  func.func @transform_7(%arg0: i32) -> i32 {
    %c0_i32 = arith.constant 0 : i32
    %c0_i32_0 = arith.constant 0 : i32
    return %c0_i32 : i32
  }
}

</mosaic_0001>

<bundles_post_ra>
// kernel: tpu_custom_call.1
= control target key start
LH: loop header
LB: loop body
LE: loop exit
PB: predicated region body
PF: predicated region fallthrough
CT: control target
= control target key end

     0   :  { %s1187_s0 = inlined_call_operand.hbm [shape: f32[16,64], index: 0, kind: input, shape index: {}]   ;;  %s1188_s1 = inlined_call_operand.hbm [shape: f32[16,64], index: 1, kind: input, shape index: {}]   ;;  %s1189_s2 = inlined_call_operand.hbm [shape: f32[16,64], index: 2, kind: input, shape index: {}]   ;;  %s1190_s3 = inlined_call_operand.vmem [shape: f32[2,64], index: 3, kind: input, shape index: {}]   ;;  %s1191_s4 = inlined_call_operand.hbm [shape: f32[2,64], index: 4, kind: input, shape index: {}]   ;;  %s1192_s5 = inlined_call_operand.vmem [shape: f32[2,16], index: 5, kind: input, shape index: {}]   ;;  %s1193_s6 = inlined_call_operand.hbm [shape: f32[2,16], index: 6, kind: input, shape index: {}]   ;;  %s1194_s7 = inlined_call_operand.hbm [shape: f32[3], index: 7, kind: output, shape index: {}]  }
   0x1   :  { %1196 = sst [smem:[#allocation19_spill]] %s1188_s1 }
   0x2   :  { %1197 = sst [smem:[#allocation20_spill]] %s1191_s4 }
   0x3   :  { %12 = vsyncpa [#allocation6], 0 }
   0x4   :  { %14 = vsyncpa [#allocation6 + $0x1], 0 }
   0x5   :  { %15 = vsyncpa [#allocation9], 0 }
   0x6   :  { %17 = vsyncpa [#allocation9 + $0x1], 0 }
   0x7   :  { %18 = vsyncpa [#allocation12], 0 }
   0x8   :  { %19 = vsyncpa [#allocation7], 0  ;;  %s995_s24 = smov 0   ;;  %s997_s25 = smov 0  }
   0x9   :  { %s999_s26 = smov 0   ;;  %s1001_s27 = smov 0  }
   0xa LB: > { %s1014_s28 = sadd.s32 4294967295, %s949_s27   ;;  %p45_p0 = scmp.ne.s32.totalorder %s941_s25, %s937_s24  ;;  %s949_s27 = sphi %s1001_s27, %s1208_s27   ;;  %s945_s26 = sphi %s999_s26, %s1207_s26   ;;  %s941_s25 = sphi %s997_s25, %s1206_s25   ;;  %s937_s24 = sphi %s995_s24, %s1205_s24  }
   0xb   : > { %p46_p1 = scmp.eq.s32.totalorder %s1014_s28, 0  ;;  %p621_p2 = scmp.ge.s32.totalorder %s949_s27, 1 }
   0xc   : > { %p213_p3 = scmp.lt.s32.totalorder %s949_s27, 3  ;;  %p622_p4 = scmp.ne.s32.totalorder %s1014_s28, 0 }
   0xd   : > { %p1023_p5 = por %p46_p1, %p45_p0  ;;  %s1199_s4 = sld [smem:[#allocation20_spill]] }
   0xe   : > { %p1030_p6 = pnand %p621_p2, %p213_p3  ;;  %s951_s11 = smov [#allocation11]  }
   0xf   : > { %s230_s12 = sshll.u32 %s951_s11, 4  ;;  %s1043_s14 = sadd.s32 1, %s949_s27   ;;  %s231_s12 = int_to_ptr.vmem [resolvable:$true] %s230_s12 }
  0x10   : > { %p675_p7 = pneg %p1030_p6  ;;  %s32_s15 = sadd.s32 1, %s945_s26 }
  0x11   : > { %s29_s16 = ssub.s32 %s949_s27, %s1043_s14  ;;  %p39_p10 = scmp.ne.s32.totalorder %s945_s26, %s941_s25 }
  0x12   : > { %p1038_p8 = pnand %p675_p7, %p46_p1  ;;  %p30_p9 = scmp.eq.s32.totalorder %s29_s16, 0 }
  0x13   : > { %s228_s9 = sshll.u32 %s1199_s4, 4  ;;  %p40_p11 = scmp.eq.s32.totalorder %s949_s27, 0  ;;  %s229_s9 = int_to_ptr.hbm [resolvable:$true] %s228_s9 }
  0x14   : > { %678 = dma.hbm_to_vmem [thread:$0]  (!%p1038_p8), %s229_s9, 32, %s231_s12, [#allocation12]  }
  0x15   : > { %p694_p12 = scmp.lt.s32.totalorder %s949_s27, 2  ;;  %p41_p13 = por %p40_p11, %p39_p10 }
  0x16   : > { %s1055_s17 = scalar_select %p30_p9, %s945_s26, %s32_s15  }
  0x17   : > { %s1195_s18 = sand.u32 1, %s945_s26   ;;  %s1063_s20 = sshll.u32 %s949_s27, 3 }
  0x18   : > { %s1060_s19 = sshll.u32 %s1195_s18, 3  ;;  %p1065_p0 = pnand %p694_p12, %p41_p13 }
  0x19   : > { %s275_s22 = sand.u32 1, %s949_s27   ;;  %s1203_s1 = sld [smem:[#allocation19_spill]] }
  0x1a   : > { %s279_s9 = scalar_lea.vmem [#allocation8], %s1060_s19  ;;  %s1075_s12 = scalar_lea.sflag [#allocation9], %s275_s22 }
  0x1b   : > { %s287_s11 = sshll.u32 %s279_s9, 4  ;;  %p773_p3 = pneg %p1065_p0  ;;  %s288_s11 = int_to_ptr.vmem [resolvable:$true] %s287_s11 }
  0x1f   : > { %s283_s30 = scalar_lea.hbm %s1203_s1, %s1063_s20  ;;  %s776_s24 = scalar_lea.hbm %s1203_s1, 16 }
  0x20   : > { %s285_s8 = sshll.u32 %s283_s30, 4  ;;  %s286_s8 = int_to_ptr.hbm [resolvable:$true] %s285_s8 }
  0x21   : > { %s769_s15 = sshra.s32 %s286_s8, 4  ;;  %s770_s15 = int_to_ptr.hbm [resolvable:$true] %s769_s15 }
  0x22   : > { %s771_s16 = scalar_lea.hbm %s770_s15, 8  ;;  %p777_p10 = scmp.lt.s32.totalorder %s770_s15, %s1203_s1 }
  0x23   : > { %p772_p2 = scmp.ne.s32.totalorder %s770_s15, %s771_s16  ;;  %p778_p11 = scmp.lt.s32.totalorder %s776_s24, %s771_s16 }
  0x25   : > { %p774_p7 = pnand %p773_p3, %p772_p2  ;;  %p779_p12 = por %p778_p11, %p777_p10 }
  0x27   : > { %p775_p9 = pneg %p774_p7 }
  0x29   : > { %p780_p13 = pnand %p779_p12, %p775_p9 }
  0x2b   : > { %783 = shalt.err (!%p780_p13)
}
  0x2c   : > { %688 = dma.hbm_to_vmem [thread:$0]  (!%p1065_p0), %s286_s8, 128, %s288_s11, %s1075_s12  }
  0x2d   : > { %s243_s27 = sshll.u32 %s1193_s6, 4  ;;  %s952_s23 = smov [#allocation13]   ;;  %s244_s27 = int_to_ptr.hbm [resolvable:$true] %s243_s27 }
  0x2e   : > { %s245_s15 = sshll.u32 %s952_s23, 4  ;;  %s264_s30 = scalar_lea.hbm %s1187_s0, %s1063_s20  ;;  %s246_s15 = int_to_ptr.vmem [resolvable:$true] %s245_s15 }
  0x2f   : > { %681 = dma.hbm_to_vmem [thread:$0]  (!%p1038_p8), %s244_s27, 32, %s246_s15, [#allocation12]  }
  0x30   : > { %s266_s9 = sshll.u32 %s264_s30, 4  ;;  %s260_s1 = scalar_lea.vmem [#allocation5], %s1060_s19  ;;  %s267_s9 = int_to_ptr.hbm [resolvable:$true] %s266_s9 }
  0x31   : > { %s268_s4 = sshll.u32 %s260_s1, 4  ;;  %s1204_s8 = sand.u32 1, %s945_s26   ;;  %s269_s4 = int_to_ptr.vmem [resolvable:$true] %s268_s4 }
  0x32   : > { %s257_s11 = scalar_lea.sflag [#allocation6], %s1204_s8  ;;  %s829_s18 = sshra.s32 %s267_s9, 4  ;;  %s830_s18 = int_to_ptr.hbm [resolvable:$true] %s829_s18 }
  0x33   : > { %s831_s22 = scalar_lea.hbm %s830_s18, 8  ;;  %s836_s23 = scalar_lea.hbm %s1187_s0, 16 }
  0x34   : > { %p832_p2 = scmp.ne.s32.totalorder %s830_s18, %s831_s22  ;;  %p837_p8 = scmp.lt.s32.totalorder %s830_s18, %s1187_s0 }
  0x35   : > { %p838_p10 = scmp.lt.s32.totalorder %s836_s23, %s831_s22 }
  0x36   : > { %p834_p7 = pnand %p832_p2, %p773_p3 }
  0x37   : > { %p839_p11 = por %p838_p10, %p837_p8 }
  0x38   : > { %p835_p9 = pneg %p834_p7 }
  0x3a   : > { %p840_p12 = pnand %p839_p11, %p835_p9 }
  0x3c   : > { %843 = shalt.err (!%p840_p12)
}
  0x3d   : > { %685 = dma.hbm_to_vmem [thread:$0]  (!%p1065_p0), %s267_s9, 128, %s269_s4, %s257_s11  }
  0x3e   : > { %s302_s30 = scalar_lea.hbm %s1189_s2, %s1063_s20  ;;  %s298_s13 = scalar_lea.vmem [#allocation10], %s1060_s19 }
  0x3f   : > { %s304_s8 = sshll.u32 %s302_s30, 4  ;;  %s306_s27 = sshll.u32 %s298_s13, 4  ;;  %s305_s8 = int_to_ptr.hbm [resolvable:$true] %s304_s8  ;;  %s307_s27 = int_to_ptr.vmem [resolvable:$true] %s306_s27 }
  0x40   : > { %s859_s18 = sshra.s32 %s305_s8, 4  ;;  %s866_s4 = scalar_lea.hbm %s1189_s2, 16  ;;  %s860_s18 = int_to_ptr.hbm [resolvable:$true] %s859_s18 }
  0x41   : > { %s861_s22 = scalar_lea.hbm %s860_s18, 8  ;;  %p867_p9 = scmp.lt.s32.totalorder %s860_s18, %s1189_s2 }
  0x42   : > { %p862_p13 = scmp.ne.s32.totalorder %s860_s18, %s861_s22  ;;  %p868_p8 = scmp.lt.s32.totalorder %s866_s4, %s861_s22 }
  0x44   : > { %p864_p2 = pnand %p862_p13, %p773_p3  ;;  %p869_p10 = por %p868_p8, %p867_p9 }
  0x46   : > { %p865_p7 = pneg %p864_p2 }
  0x48   : > { %p870_p11 = pnand %p869_p10, %p865_p7 }
  0x4a   : > { %873 = shalt.err (!%p870_p11)
}
  0x4b   : > { %691 = dma.hbm_to_vmem [thread:$0]  (!%p1065_p0), %s305_s8, 128, %s307_s27, %s1075_s12  }
  0x4c   : > { %315 = sbr.rel (%p1030_p6) target bundleno = 576 (0x240), region = 48  ;;  %s317_s19 = sand.u32 (!%p1030_p6), 1, %s941_s25  }
  0x4d   : > { %s1134_s20 = sshll.u32 (!%p1030_p6), %s317_s19, 3  ;;  %s318_s16 = scalar_lea.sflag (!%p1030_p6), [#allocation6], %s317_s19 }
  0x4e   : > { %s321_s1 = scalar_lea.vmem (!%p1030_p6), [#allocation5], %s1134_s20 }
  0x51   : > { %920 = dma.done.wait (%p1023_p5), %s318_s16, 128  }
  0x52   : > { %922 = vsyncadd (%p1023_p5), %s318_s16, 4294967168  ;;  %s327_s21 = sand.u32 1, %s1014_s28   ;;  %s331_s10 = scalar_lea.vmem [#allocation8], %s1134_s20 }
  0x53   : > { %s328_s12 = scalar_lea.sflag [#allocation9], %s327_s21 }
  0x54   : > { %924 = dma.done.wait (%p1023_p5), %s328_s12, 256  }
  0x55   : > { %926 = vsyncadd (%p1023_p5), %s328_s12, 4294967040  ;;  %s341_s24 = scalar_lea.vmem [#allocation10], %s1134_s20 }
  0x56   : > { %928 = dma.done.wait (%p46_p1), [#allocation12], 64  }
  0x57   : > { %930 = vsyncadd (%p46_p1), [#allocation12], 4294967232  ;;  %391 = sbr.rel (%p622_p4) target bundleno = 309 (0x135), region = 72 }
  0x5c   : > { %v394_v0 = vld [vmem:[%s1190_s3] sm:$0x3]  ;;  %v395_v7 = vld [vmem:[#allocation11] sm:$0x3]  ;;  %v427_v17 = vld [vmem:[#allocation13] sm:$0x3] }
  0x5d   : > { %v399_v1 = vand.u32 2147483647, %v394_v0  ;;  %v396_v9 = vmax.f32 %v394_v0, 0.0  ;;  %v397_v10 = vmul.f32 %v395_v7, %v394_v0  ;;  %v426_v16 = vld [vmem:[%s1192_s5] sm:$0x3]  ;;  %vm413_vm1 = vcmask 517120  }
  0x5e   : > { %v428_v20 = vsub.f32 %v426_v16, %v427_v17  ;;  %vm430_vm2 = vcmask 123904   ;;  %vm392_vm3 = vcmask 0   ;;  %v953_v24 = vmov 0.0  }
  0x5f   : > { %v400_v2 = vsub.f32 0.0, %v399_v1  ;;  %v398_v14 = vsub.f32 %v396_v9, %v397_v10  ;;  %393 = vst.msk [vmem:[#allocation2] sm:$0x1] %vm392_vm3, %v953_v24 }
  0x60   : > { %v429_v22 = vand.u32 2147483647, %v428_v20 }
  0x61   : > { %v401_v3 = vmul.f32 1.442695, %v400_v2 }
  0x62   : > { %v431_v23 = vsel %vm430_vm2, %v429_v22, 0.0 }
  0x63   : > { %735 = vpow2.f32 %v401_v3 }
  0x69   : > { %v736_v4 = vpop.eup %735 }
  0x6a   : > { %v403_v5 = vadd.f32 1.0, %v736_v4  ;;  %v406_v6 = vmul.f32 -0.5, %v736_v4  ;;  %v409_v11 = vand.u32 2147483647, %v736_v4 }
  0x6c   : > { %737 = vlog2.f32 %v403_v5  ;;  %v407_v8 = vadd.f32 1.0, %v406_v6  ;;  %vm410_vm0 = vcmp.lt.f32.partialorder %v409_v11, 0.0004427343 }
  0x6e   : > { %v408_v12 = vmul.f32 %v736_v4, %v407_v8 }
  0x72   : > { %v738_v13 = vpop.eup %737 }
  0x73   : > { %v405_v15 = vmul.f32 0.6931472, %v738_v13 }
  0x75   : > { %v411_v18 = vsel %vm410_vm0, %v408_v12, %v405_v15 }
  0x76   : > { %v412_v19 = vadd.f32 %v411_v18, %v398_v14 }
  0x78   : > { %v414_v21 = vsel %vm413_vm1, %v412_v19, 0.0 }
  0x79   : > { %415 = vadd.xlane.f32.xlu0 %v414_v21 }
  0x81   : > { %432 = vadd.xlane.f32.xlu0 %v431_v23 }
  0xec   : > { %v416_v25 = vpop.xlane.xlu0 %415 }
  0xed   : > { %v417_v26 = vrot.slane %v416_v25, 4 }
  0xef   : > { %v418_v27 = vadd.f32 %v417_v26, %v416_v25 }
  0xf1   : > { %v419_v28 = vrot.slane %v418_v27, 2 }
  0xf3   : > { %v420_v29 = vadd.f32 %v419_v28, %v418_v27 }
  0xf4   : > { %v433_v30 = vpop.xlane.xlu0 %432 }
  0xf5   : > { %v434_v31 = vrot.slane %v433_v30, 4  ;;  %v421_v32 = vrot.slane %v420_v29, 1 }
  0xf7   : > { %v435_v33 = vadd.f32 %v434_v31, %v433_v30  ;;  %v422_v34 = vadd.f32 %v421_v32, %v420_v29 }
  0xf9   : > { %v436_v35 = vrot.slane %v435_v33, 2  ;;  %643 = vpush %v422_v34 }
  0xfb   : > { %v437_v36 = vadd.f32 %v436_v35, %v435_v33 }
  0xfd   : > { %v438_v37 = vrot.slane %v437_v36, 1 }
  0xff   : > { %v439_v38 = vadd.f32 %v438_v37, %v437_v36 }
 0x101   : > { %645 = vpush %v439_v38 }
 0x12a   : > { %s644_s27 = spop %643 }
 0x12b   : > { %v424_v39 = vstv %s644_s27 }
 0x12c   : > { %425 = vst.msk [vmem:[#allocation3] sm:$0x1] %vm392_vm3, %v424_v39 }
 0x132   : > { %s646_s18 = spop %645 }
 0x133   : > { %v441_v40 = vstv %s646_s18 }
 0x134   : > { %442 = vst.msk [vmem:[#allocation4] sm:$0x1] %vm392_vm3, %v441_v40 }
 0x135 PF: > { %v443_v41 = vld [vmem:[%s341_s24] sm:$0xff]  ;;  %v446_v43 = vld [vmem:[%s331_s10] sm:$0xff]  ;;  %vm450_vm4 = vcmask 523264   ;;  %vm476_vm5 = vcmask 0   ;;  %p638_p1 = scmp.ne.s32.totalorder %s1014_s28, 1 }
 0x136   : > { %v444_v42 = vld [vmem:[%s321_s1] sm:$0xff]  ;;  %v447_v46 = vsub.f32 %v446_v43, %v443_v41  ;;  %v448_v1 = vld [vmem:[#allocation2] sm:$0x1] }
 0x137   : > { %v445_v44 = vsub.f32 %v444_v42, %v443_v41 }
 0x138   : > { %v462_v48 = vmul.f32 %v447_v46, %v447_v46 }
 0x139   : > { %v449_v45 = vmul.f32 %v445_v44, %v445_v44 }
 0x13a   : > { %v463_v49 = vsel %vm450_vm4, %v462_v48, 0.0 }
 0x13b   : > { %v451_v47 = vsel %vm450_vm4, %v449_v45, 0.0 }
 0x13c   : > { %452 = vadd.xlane.f32.xlu0 %v451_v47 }
 0x144   : > { %464 = vadd.xlane.f32.xlu0 %v463_v49 }
 0x1af   : > { %v453_v50 = vpop.xlane.xlu0 %452 }
 0x1b0   : > { %v454_v51 = vrot.slane %v453_v50, 4 }
 0x1b2   : > { %v455_v52 = vadd.f32 %v454_v51, %v453_v50 }
 0x1b4   : > { %v456_v53 = vrot.slane %v455_v52, 2 }
 0x1b6   : > { %v457_v54 = vadd.f32 %v456_v53, %v455_v52 }
 0x1b7   : > { %v465_v55 = vpop.xlane.xlu0 %464 }
 0x1b8   : > { %v466_v56 = vrot.slane %v465_v55, 4  ;;  %v458_v57 = vrot.slane %v457_v54, 1 }
 0x1ba   : > { %v467_v58 = vadd.f32 %v466_v56, %v465_v55  ;;  %v459_v59 = vadd.f32 %v458_v57, %v457_v54 }
 0x1bc   : > { %v468_v60 = vrot.slane %v467_v58, 2  ;;  %647 = vpush %v459_v59 }
 0x1be   : > { %v469_v61 = vadd.f32 %v468_v60, %v467_v58 }
 0x1c0   : > { %v470_v62 = vrot.slane %v469_v61, 1 }
 0x1c2   : > { %v471_v63 = vadd.f32 %v470_v62, %v469_v61 }
 0x1c4   : > { %649 = vpush %v471_v63 }
 0x1ed   : > { %s648_s22 = spop %647 }
 0x1ee   : > { %v461_v0 = vstv %s648_s22 }
 0x1f5   : > { %s650_s23 = spop %649 }
 0x1f6   : > { %v473_v2 = vstv %s650_s23 }
 0x1f7   : > { %v474_v3 = vadd.f32 %v473_v2, %v461_v0  ;;  %481 = sbr.rel (%p638_p1) target bundleno = 570 (0x23a), region = 76 }
 0x1f9   : > { %v475_v4 = vadd.f32 %v474_v3, %v448_v1 }
 0x1fb   : > { %477 = vst.msk [vmem:[#allocation2] sm:$0x1] %vm476_vm5, %v475_v4 }
 0x1fc   : > { %v488_v6 = vld [vmem:[#allocation3] sm:$0x1]  ;;  %v494_v7 = vld [vmem:[#allocation4] sm:$0x1] }
 0x202   : > { %v482_v5 = vld [vmem:[#allocation2] sm:$0x1] }
 0x203   : > { %651 = vpush %v482_v5 }
 0x204   : > { %653 = vpush %v488_v6 }
 0x205   : > { %655 = vpush %v494_v7 }
 0x234   : > { %s652_s15 = spop %651 }
 0x235   : > { %s485_s4 = smul.f32 0.0009765625, %s652_s15  ;;  %s654_s9 = spop %653 }
 0x236   : > { %s491_s11 = smul.f32 0.0078125, %s654_s9  ;;  %s656_s19 = spop %655 }
 0x237   : > { %487 = sst [smem:[#allocation14]] %s485_s4  ;;  %s497_s20 = smul.f32 0.03125, %s656_s19 }
 0x238   : > { %493 = sst [smem:[#allocation14 + $0x1]] %s491_s11 }
 0x239   : > { %499 = sst [smem:[#allocation14 + $0x2]] %s497_s20 }
 0x23a PF: > { %p697_p4 = scmp.eq.s32.totalorder %s1014_s28, 1  ;;  %s506_s21 = sshll.u32 %s1194_s7, 4  ;;  %s507_s21 = int_to_ptr.hbm [resolvable:$true] %s506_s21 }
 0x23b   : > { %s954_s12 = smov [#allocation14]  }
 0x23c   : > { %672 = dma.smem_to_hbm (%p697_p4), %s954_s12, 16, %s507_s21, [#allocation7]  }
 0x23d   : > { %932 = dma.done.wait (%p697_p4), [#allocation7], 16  }
 0x23e   : > { %934 = vsyncadd (%p697_p4), [#allocation7], 4294967280 }
 0x23f   : > { %515 = sfence }
 0x240 PF: > { %p22_p5 = scmp.ge.s32.totalorder %s1043_s14, 4   ;;  %s1205_s24 = smov %s941_s25 }
 0x241   : > { %s1206_s25 = smov %s945_s26  ;;  %s1207_s26 = smov %s1055_s17 }
 0x242   : > { %s1208_s27 = smov %s1043_s14  ;;  %24 = sbr.rel (!%p22_p5) target bundleno = 10 (0xa), region = 128 }
 0x247   :  { %521 = vsyncpa [#allocation6], 1 }
 0x248   :  { %523 = vsyncpa [#allocation6 + $0x1], 1 }
 0x249   :  { %524 = vsyncpa [#allocation9], 1 }
 0x24a   :  { %526 = vsyncpa [#allocation9 + $0x1], 1 }
 0x24b   :  { %527 = vsyncpa [#allocation12], 1 }
 0x24c   :  { %528 = vsyncpa [#allocation7], 1 }
 0x24d   :  { %530 = vsyncpa [#allocation7 + $0x1], 1 }

</bundles_post_ra>
